<compile_context>
chip_gen: v6e
topology: v6e:2x2x1
jax: 0.10.0
libtpu: 0.0.40
codegen_flags: <defaults>
</compile_context>

<pallas_src>
import math

import jax
import jax.numpy as jnp
from jax.experimental import pallas as pl
from jax.experimental.pallas import tpu as pltpu

XI_SQ = math.pi / 8.0
ALPHA = 4.0 - 2.0 * math.sqrt(2.0)
BETA = -math.log(math.sqrt(2.0) + 1.0)

_LANE = 128
_TARGET_BLOCK_BYTES = 1 << 20  # ~1 MiB per array per block


def _npn_sigmoid_kernel(om_ref, os_ref, am_ref, as_ref):
    # Upcast to f32: the subtraction `sigmoid(...) - a_m^2` is
    # cancellation-prone in bf16, and v5e has no bf16 VPU/EUP path.
    o_m = om_ref[...].astype(jnp.float32)
    o_s = os_ref[...].astype(jnp.float32)

    # sigmoid(x) = 0.5 + 0.5 * tanh(0.5 * x): a single EUP push per sigmoid
    # (jax.nn.sigmoid lowers to exp + divide -> 2-3x the EUP/VPU cost).
    inv_m = jax.lax.rsqrt(1.0 + XI_SQ * o_s)
    a_m = 0.5 + 0.5 * jnp.tanh(0.5 * (o_m * inv_m))

    inv_s = jax.lax.rsqrt(1.0 + (XI_SQ * ALPHA * ALPHA) * o_s)
    a_s = 0.5 + 0.5 * jnp.tanh((0.5 * ALPHA) * ((o_m + BETA) * inv_s)) - a_m * a_m

    am_ref[...] = a_m.astype(am_ref.dtype)
    as_ref[...] = a_s.astype(as_ref.dtype)


def _round_up(x: int, m: int) -> int:
    return -(-x // m) * m


def _choose_block_rows(rows: int, cols: int, itemsize: int) -> int:
    """Pick a sublane-aligned row-block: ~1 MiB/array/block, >= ~4 grid steps."""
    # Packed-dtype sublane tile: f32 -> 8, bf16/f16 -> 16, int8/fp8 -> 32.
    sublane_tile = max(8, 32 // max(1, itemsize))
    if rows <= sublane_tile:
        return rows  # single full block (full-dim exemption from the 8-rule)

    # ~1 MiB per array per block, rounded down to the sublane tile.
    target = max(sublane_tile,
                 (_TARGET_BLOCK_BYTES // (cols * itemsize)) // sublane_tile * sublane_tile)

    # Prefer >= 4 grid steps so v7x can shard the parallel axis across both
    # TensorCores and DMA/compute overlap exists even for mid-size tensors.
    quarter = _round_up(-(-rows // 4), sublane_tile)

    block_rows = max(sublane_tile, min(target, quarter))
    if block_rows >= rows:
        block_rows = rows
    return block_rows


def npn_sigmoid(o_m: jax.Array, o_s: jax.Array):
    assert o_m.shape == o_s.shape, "mean/variance shapes must match"
    assert o_m.dtype == o_s.dtype
    orig_shape = o_m.shape
    dtype = o_m.dtype
    itemsize = jnp.dtype(dtype).itemsize
    n = o_m.size

    if n == 0:
        z = jnp.zeros(orig_shape, dtype)
        return z, z

    # Choose a copy-free 2D view.
    if n % _LANE == 0:
        rows, cols = n // _LANE, _LANE            # lane-dense slab (free reshape)
    elif o_m.ndim >= 2:
        cols = orig_shape[-1]                     # natural 2D view (collapse leading)
        rows = n // cols
    else:
        rows, cols = 1, n                         # odd 1D vector

    om2d = o_m.reshape(rows, cols)
    os2d = o_s.reshape(rows, cols)

    block_rows = _choose_block_rows(rows, cols, itemsize)
    grid = (pl.cdiv(rows, block_rows),)           # ragged tail -> masked partial block
    spec = pl.BlockSpec((block_rows, cols), lambda i: (i, 0))

    # 4 arrays x 2 pipeline buffers x block bytes; raise scoped VMEM only if a
    # pathological (huge odd last-dim) shape forces an oversized minimal block.
    vmem_need = 4 * 2 * block_rows * cols * itemsize
    compiler_kwargs = dict(dimension_semantics=("parallel",))
    if vmem_need > (12 << 20):
        compiler_kwargs["vmem_limit_bytes"] = int(min(vmem_need + (4 << 20), 64 << 20))

    a_m2d, a_s2d = pl.pallas_call(
        _npn_sigmoid_kernel,
        out_shape=(
            jax.ShapeDtypeStruct((rows, cols), dtype),
            jax.ShapeDtypeStruct((rows, cols), dtype),
        ),
        grid_spec=pltpu.PrefetchScalarGridSpec(
            num_scalar_prefetch=0,
            grid=grid,
            in_specs=[spec, spec],
            out_specs=[spec, spec],
        ),
        compiler_params=pltpu.CompilerParams(**compiler_kwargs),
    )(om2d, os2d)

    return a_m2d.reshape(orig_shape), a_s2d.reshape(orig_shape)


def _npn_sigmoid_ref(o_m, o_s):
    o_m = o_m.astype(jnp.float32)
    o_s = o_s.astype(jnp.float32)
    a_m = jax.nn.sigmoid(o_m / jnp.sqrt(1.0 + XI_SQ * o_s))
    a_s = (
        jax.nn.sigmoid(
            ALPHA * (o_m + BETA) / jnp.sqrt(1.0 + XI_SQ * ALPHA ** 2 * o_s)
        )
        - a_m ** 2
    )
    return a_m, a_s


if __name__ == "__main__":
    key = jax.random.PRNGKey(0)

    # (shape, dtype, atol):
    #   (2,4,16,16) f32  -> 2048 elems, lane-dense slab path, grid of 2 blocks
    #   (3,5,37)    f32  -> ragged path: natural (15, 37) view, masked tail block
    #   (37,)       f32  -> odd 1D vector, single full block
    #   (2,4,16,16) bf16 -> dtype-scaled sublane tile / f32-internal math path
    cases = [
        ((2, 4, 16, 16), jnp.float32, 1e-5),
        ((3, 5, 37), jnp.float32, 1e-5),
        ((37,), jnp.float32, 1e-5),
        ((2, 4, 16, 16), jnp.bfloat16, 2e-2),
    ]

    ok = True
    for shape, dtype, atol in cases:
        key, k1, k2 = jax.random.split(key, 3)
        o_m = jax.random.normal(k1, shape, dtype=jnp.float32)
        # o_s is a variance; keep it non-negative (softplus of gaussian noise).
        o_s = jax.nn.softplus(jax.random.normal(k2, shape, dtype=jnp.float32))
        o_m = o_m.astype(dtype)
        o_s = o_s.astype(dtype)

        a_m, a_s = npn_sigmoid(o_m, o_s)
        jax.block_until_ready((a_m, a_s))

        ref_m, ref_s = _npn_sigmoid_ref(o_m, o_s)
        ok &= a_m.shape == shape and a_s.shape == shape and a_m.dtype == dtype
        ok &= bool(jnp.allclose(a_m.astype(jnp.float32), ref_m, atol=atol, rtol=1e-3))
        ok &= bool(jnp.allclose(a_s.astype(jnp.float32), ref_s, atol=atol, rtol=1e-3))

    assert ok
    print("KERNEL_OK")
</pallas_src>

<mosaic_0001>
module attributes {stable_mosaic.version = 11 : i64} {
  func.func @_npn_sigmoid_kernel(%arg0: i32, %arg1: memref<8x128xf32, #tpu.memory_space<vmem>>, %arg2: memref<8x128xf32, #tpu.memory_space<vmem>>, %arg3: memref<8x128xf32, #tpu.memory_space<vmem>>, %arg4: memref<8x128xf32, #tpu.memory_space<vmem>>) attributes {dimension_semantics = [#tpu.dimension_semantics<parallel>], iteration_bounds = array<i64: 2>, scalar_prefetch = 0 : i64, scratch_operands = 0 : i64, tpu.core_type = #tpu.core_type<tc>, window_params = [{transform_indices = @transform_0, window_bounds = array<i64: 8, 128>}, {transform_indices = @transform_1, window_bounds = array<i64: 8, 128>}, {transform_indices = @transform_2, window_bounds = array<i64: 8, 128>}, {transform_indices = @transform_3, window_bounds = array<i64: 8, 128>}]} {
    %c0 = arith.constant 0 : index
    %c0_0 = arith.constant 0 : index
    %0 = vector.load %arg1[%c0, %c0_0] : memref<8x128xf32, #tpu.memory_space<vmem>>, vector<8x128xf32>
    %c0_1 = arith.constant 0 : index
    %c0_2 = arith.constant 0 : index
    %1 = vector.load %arg2[%c0_1, %c0_2] : memref<8x128xf32, #tpu.memory_space<vmem>>, vector<8x128xf32>
    %cst = arith.constant 0.392699093 : f32
    %2 = vector.broadcast %cst : f32 to vector<8x128xf32>
    %3 = arith.mulf %2, %1 : vector<8x128xf32>
    %cst_3 = arith.constant 1.000000e+00 : f32
    %4 = vector.broadcast %cst_3 : f32 to vector<8x128xf32>
    %5 = arith.addf %4, %3 : vector<8x128xf32>
    %6 = math.rsqrt %5 : vector<8x128xf32>
    %7 = arith.mulf %0, %6 : vector<8x128xf32>
    %cst_4 = arith.constant 5.000000e-01 : f32
    %8 = vector.broadcast %cst_4 : f32 to vector<8x128xf32>
    %9 = arith.mulf %8, %7 : vector<8x128xf32>
    %10 = math.tanh %9 : vector<8x128xf32>
    %cst_5 = arith.constant 5.000000e-01 : f32
    %11 = vector.broadcast %cst_5 : f32 to vector<8x128xf32>
    %12 = arith.mulf %11, %10 : vector<8x128xf32>
    %cst_6 = arith.constant 5.000000e-01 : f32
    %13 = vector.broadcast %cst_6 : f32 to vector<8x128xf32>
    %14 = arith.addf %13, %12 : vector<8x128xf32>
    %cst_7 = arith.constant 0.539012074 : f32
    %15 = vector.broadcast %cst_7 : f32 to vector<8x128xf32>
    %16 = arith.mulf %15, %1 : vector<8x128xf32>
    %cst_8 = arith.constant 1.000000e+00 : f32
    %17 = vector.broadcast %cst_8 : f32 to vector<8x128xf32>
    %18 = arith.addf %17, %16 : vector<8x128xf32>
    %19 = math.rsqrt %18 : vector<8x128xf32>
    %cst_9 = arith.constant -0.881373584 : f32
    %20 = vector.broadcast %cst_9 : f32 to vector<8x128xf32>
    %21 = arith.addf %0, %20 : vector<8x128xf32>
    %22 = arith.mulf %21, %19 : vector<8x128xf32>
    %cst_10 = arith.constant 0.585786462 : f32
    %23 = vector.broadcast %cst_10 : f32 to vector<8x128xf32>
    %24 = arith.mulf %23, %22 : vector<8x128xf32>
    %25 = math.tanh %24 : vector<8x128xf32>
    %cst_11 = arith.constant 5.000000e-01 : f32
    %26 = vector.broadcast %cst_11 : f32 to vector<8x128xf32>
    %27 = arith.mulf %26, %25 : vector<8x128xf32>
    %cst_12 = arith.constant 5.000000e-01 : f32
    %28 = vector.broadcast %cst_12 : f32 to vector<8x128xf32>
    %29 = arith.addf %28, %27 : vector<8x128xf32>
    %30 = arith.mulf %14, %14 : vector<8x128xf32>
    %31 = arith.subf %29, %30 : vector<8x128xf32>
    %c0_13 = arith.constant 0 : index
    %c0_14 = arith.constant 0 : index
    %32 = vector.load %arg3[%c0_13, %c0_14] : memref<8x128xf32, #tpu.memory_space<vmem>>, vector<8x128xf32>
    tpu.vector_store %arg3[%c0_13, %c0_14], %14 {strides = array<i32>} : memref<8x128xf32, #tpu.memory_space<vmem>>, vector<8x128xf32>,
    %c0_15 = arith.constant 0 : index
    %c0_16 = arith.constant 0 : index
    %33 = vector.load %arg4[%c0_15, %c0_16] : memref<8x128xf32, #tpu.memory_space<vmem>>, vector<8x128xf32>
    tpu.vector_store %arg4[%c0_15, %c0_16], %31 {strides = array<i32>} : memref<8x128xf32, #tpu.memory_space<vmem>>, vector<8x128xf32>,
    return
  }
  func.func @transform_0(%arg0: i32) -> (i32, i32) {
    %c0_i32 = arith.constant 0 : i32
    %c0_i32_0 = arith.constant 0 : i32
    return %arg0, %c0_i32 : i32, i32
  }
  func.func @transform_1(%arg0: i32) -> (i32, i32) {
    %c0_i32 = arith.constant 0 : i32
    %c0_i32_0 = arith.constant 0 : i32
    return %arg0, %c0_i32 : i32, i32
  }
  func.func @transform_2(%arg0: i32) -> (i32, i32) {
    %c0_i32 = arith.constant 0 : i32
    %c0_i32_0 = arith.constant 0 : i32
    return %arg0, %c0_i32 : i32, i32
  }
  func.func @transform_3(%arg0: i32) -> (i32, i32) {
    %c0_i32 = arith.constant 0 : i32
    %c0_i32_0 = arith.constant 0 : i32
    return %arg0, %c0_i32 : i32, i32
  }
}

</mosaic_0001>

<bundles_post_ra>
// kernel: tpu_custom_call.1
= control target key start
LH: loop header
LB: loop body
LE: loop exit
PB: predicated region body
PF: predicated region fallthrough
CT: control target
= control target key end

     0   :  { %9 = vsyncpa [#allocation3], 0  ;;  %s918_s0 = inlined_call_operand.hbm [shape: f32[16,128], index: 0, kind: input, shape index: {}]   ;;  %s919_s1 = inlined_call_operand.hbm [shape: f32[16,128], index: 1, kind: input, shape index: {}]   ;;  %s920_s2 = inlined_call_operand.hbm [shape: f32[16,128], index: 2, kind: output, shape index: {0}]   ;;  %s921_s3 = inlined_call_operand.hbm [shape: f32[16,128], index: 3, kind: output, shape index: {1}]  }
   0x1   :  { %11 = vsyncpa [#allocation3 + $0x1], 0 }
   0x2   :  { %12 = vsyncpa [#allocation6], 0 }
   0x3   :  { %14 = vsyncpa [#allocation6 + $0x1], 0 }
   0x4   :  { %15 = vsyncpa [#allocation4], 0 }
   0x5   :  { %17 = vsyncpa [#allocation4 + $0x1], 0 }
   0x6   :  { %18 = vsyncpa [#allocation9], 0 }
   0x7   :  { %20 = vsyncpa [#allocation9 + $0x1], 0  ;;  %s676_s12 = smov 0   ;;  %s678_s13 = smov 0  }
   0x8   :  { %s680_s14 = smov 0   ;;  %s682_s15 = smov 0  }
   0x9 LB: > { %s697_s16 = sadd.s32 4294967295, %s650_s15   ;;  %s414_s17 = sadd.s32 4294967294, %s650_s15   ;;  %s650_s15 = sphi %s682_s15, %s940_s15   ;;  %s646_s14 = sphi %s680_s14, %s939_s14   ;;  %s642_s13 = sphi %s678_s13, %s938_s13   ;;  %s638_s12 = sphi %s676_s12, %s937_s12  }
   0xa   : > { %s701_s18 = sadd.s32 1, %s650_s15   ;;  %s33_s19 = sadd.s32 1, %s646_s14 }
   0xb   : > { %s30_s20 = ssub.s32 %s650_s15, %s701_s18  ;;  %p40_p0 = scmp.ne.s32.totalorder %s646_s14, %s642_s13 }
   0xc   : > { %p31_p1 = scmp.eq.s32.totalorder %s30_s20, 0  ;;  %p41_p2 = scmp.eq.s32.totalorder %s650_s15, 0 }
   0xd   : > { %p46_p3 = scmp.ne.s32.totalorder %s642_s13, %s638_s12  ;;  %p47_p4 = scmp.eq.s32.totalorder %s697_s16, 0 }
   0xe   : > { %s713_s21 = scalar_select %p31_p1, %s646_s14, %s33_s19  }
   0xf   : > { %p715_p5 = por %p41_p2, %p40_p0  ;;  %p719_p6 = por %p47_p4, %p46_p3 }
  0x10   : > { %p96_p7 = scmp.eq.s32.totalorder %s697_s16, 1  ;;  %p102_p8 = scmp.eq.s32.totalorder %s414_s17, 1 }
  0x11   : > { %s925_s23 = scalar_select %p719_p6, 1, 0 }
  0x12   : > { %p454_p10 = scmp.lt.s32.totalorder %s650_s15, 2  ;;  %p726_p11 = por %p96_p7, %p40_p0 }
  0x13   : > { %p730_p12 = por %p102_p8, %p46_p3  ;;  %s735_s26 = sand.u32 1, %s646_s14  }
  0x14   : > { %s926_s24 = scalar_select %p726_p11, 1, 0 }
  0x15   : > { %s927_s25 = scalar_select %p730_p12, 1, 0 }
  0x16   : > { %s418_s27 = sshll.u32 %s650_s15, 7  ;;  %s417_s28 = sshll.u32 %s735_s26, 3 }
  0x17   : > { %s744_s4 = scalar_lea.hbm %s918_s0, %s418_s27  ;;  %s152_s5 = scalar_lea.vmem [#allocation2], %s417_s28 }
  0x18   : > { %s159_s6 = sshll.u32 %s152_s5, 4  ;;  %p750_p13 = pnand %p454_p10, %p715_p5  ;;  %s754_s6 = int_to_ptr.vmem [resolvable:$true] %s159_s6 }
  0x19   : > { %s149_s8 = scalar_lea.sflag [#allocation3], %s735_s26  ;;  %s496_s9 = scalar_lea.hbm %s744_s4, 128 }
  0x1a   : > { %p497_p2 = scmp.ne.s32.totalorder %s744_s4, %s496_s9  ;;  %p498_p3 = pneg %p750_p13 }
  0x1b   : > { %s501_s17 = scalar_lea.hbm %s918_s0, 256  ;;  %p502_p5 = scmp.lt.s32.totalorder %s744_s4, %s918_s0 }
  0x1c   : > { %p499_p4 = pnand %p498_p3, %p497_p2  ;;  %p503_p8 = scmp.lt.s32.totalorder %s501_s17, %s496_s9 }
  0x1e   : > { %p500_p7 = pneg %p499_p4  ;;  %p504_p10 = por %p503_p8, %p502_p5 }
  0x20   : > { %p505_p9 = pnand %p504_p10, %p500_p7 }
  0x22   : > { %508 = shalt.err (!%p505_p9)
}
  0x23   : > { %s509_s22 = scalar_lea.vmem %s754_s6, 128  ;;  %s652_s29 = smov [#allocation2]  }
  0x24   : > { %p510_p0 = scmp.ne.s32.totalorder %s754_s6, %s509_s22  ;;  %s514_s30 = sshll.u32 %s652_s29, 4  ;;  %s515_s30 = int_to_ptr.vmem [resolvable:$false] %s514_s30 }
  0x25   : > { %s516_s5 = scalar_lea.vmem %s515_s30, 256  ;;  %p517_p1 = scmp.lt.s32.totalorder %s754_s6, %s515_s30 }
  0x26   : > { %p512_p2 = pnand %p510_p0, %p498_p3  ;;  %p518_p12 = scmp.lt.s32.totalorder %s516_s5, %s509_s22 }
  0x28   : > { %p513_p4 = pneg %p512_p2  ;;  %p519_p11 = por %p518_p12, %p517_p1 }
  0x2a   : > { %p520_p5 = pnand %p519_p11, %p513_p4 }
  0x2c   : > { %523 = shalt.err (!%p520_p5)
}
  0x2d   : > { %443 = dma.hbm_to_vmem [thread:$0]  (!%p750_p13), %s744_s4, 128, %s754_s6, %s149_s8  }
  0x2e   : > { %p929_p9 = scmp.lt.s32.totalorder %s650_s15, 3  ;;  %p930_p0 = scmp.ge.s32.totalorder %s650_s15, 1 }
  0x2f   : > { %s796_s17 = scalar_lea.hbm %s919_s1, %s418_s27  ;;  %s170_s19 = scalar_lea.vmem [#allocation5], %s417_s28 }
  0x30   : > { %p787_p7 = pnand %p930_p0, %p929_p9  ;;  %s177_s20 = sshll.u32 %s170_s19, 4  ;;  %s178_s20 = int_to_ptr.vmem [resolvable:$true] %s177_s20 }
  0x31   : > { %s167_s4 = scalar_lea.sflag [#allocation6], %s735_s26  ;;  %s524_s6 = scalar_lea.hbm %s796_s17, 128 }
  0x32   : > { %s931_s9 = scalar_select %p787_p7, 1, 0 }
  0x33   : > { %p525_p11 = scmp.ne.s32.totalorder %s796_s17, %s524_s6  ;;  %s529_s29 = scalar_lea.hbm %s919_s1, 256 }
  0x34   : > { %p530_p8 = scmp.lt.s32.totalorder %s796_s17, %s919_s1  ;;  %p531_p10 = scmp.lt.s32.totalorder %s529_s29, %s524_s6 }
  0x35   : > { %p527_p12 = pnand %p525_p11, %p498_p3 }
  0x36   : > { %p532_p2 = por %p531_p10, %p530_p8 }
  0x37   : > { %p528_p1 = pneg %p527_p12 }
  0x39   : > { %p533_p4 = pnand %p532_p2, %p528_p1 }
  0x3b   : > { %536 = shalt.err (!%p533_p4)
}
  0x3c   : > { %s537_s28 = scalar_lea.vmem %s178_s20, 128  ;;  %s653_s26 = smov [#allocation5]  }
  0x3d   : > { %p538_p5 = scmp.ne.s32.totalorder %s178_s20, %s537_s28  ;;  %s542_s5 = sshll.u32 %s653_s26, 4  ;;  %s543_s5 = int_to_ptr.vmem [resolvable:$false] %s542_s5 }
  0x3e   : > { %s544_s10 = scalar_lea.vmem %s543_s5, 256  ;;  %p545_p11 = scmp.lt.s32.totalorder %s178_s20, %s543_s5 }
  0x3f   : > { %p540_p9 = pnand %p538_p5, %p498_p3  ;;  %p546_p12 = scmp.lt.s32.totalorder %s544_s10, %s537_s28 }
  0x41   : > { %p541_p0 = pneg %p540_p9  ;;  %p547_p6 = por %p546_p12, %p545_p11 }
  0x43   : > { %p548_p7 = pnand %p547_p6, %p541_p0 }
  0x45   : > { %551 = shalt.err (!%p548_p7)
}
  0x46   : > { %446 = dma.hbm_to_vmem [thread:$0]  (!%p750_p13), %s796_s17, 128, %s178_s20, %s167_s4  }
  0x47   : > { %p932_p1 = scmp.ne.s32.totalorder %s931_s9, 0 }
  0x48   : > { %s822_s11 = sand.u32 (!%p932_p1), 1, %s642_s13   ;;  %p933_p6 = scmp.ne.s32.totalorder (!%p932_p1), %s925_s23, 0 }
  0x49   : > { %186 = sbr.rel (%p932_p1) target bundleno = 157 (0x9d), region = 28  ;;  %s825_s19 = sshll.u32 (!%p932_p1), %s822_s11, 3 }
  0x4a   : > { %s189_s6 = scalar_lea.sflag (!%p932_p1), [#allocation3], %s822_s11  ;;  %s192_s8 = scalar_lea.vmem (!%p932_p1), [#allocation2], %s825_s19 }
  0x4e   : > { %621 = dma.done.wait (%p933_p6), %s189_s6, 128  }
  0x4f   : > { %623 = vsyncadd (%p933_p6), %s189_s6, 4294967168  ;;  %s198_s7 = scalar_lea.sflag [#allocation6], %s822_s11  ;;  %s201_s9 = scalar_lea.vmem [#allocation5], %s825_s19 }
  0x50   : > { %625 = dma.done.wait (%p933_p6), %s198_s7, 128  }
  0x51   : > { %627 = vsyncadd (%p933_p6), %s198_s7, 4294967168  ;;  %v235_v0 = vld [vmem:[%s201_s9] sm:$0xff]  ;;  %v234_v5 = vld [vmem:[%s192_s8] sm:$0xff]  ;;  %s226_s23 = scalar_lea.vmem [#allocation7], %s825_s19  ;;  %s428_s20 = sshll.u32 %s697_s16, 7 }
  0x52   : > { %v236_v1 = vmul.f32 0.3926991, %v235_v0  ;;  %v244_v2 = vmul.f32 0.5390121, %v235_v0  ;;  %v247_v6 = vadd.f32 -0.8813736, %v234_v5  ;;  %s851_s30 = scalar_lea.hbm %s920_s2, %s428_s20 }
  0x53   : > { %s276_s17 = sshll.u32 %s226_s23, 4  ;;  %s233_s4 = scalar_lea.vmem [#allocation8], %s825_s19  ;;  %s841_s17 = int_to_ptr.vmem [resolvable:$true] %s276_s17 }
  0x54   : > { %v237_v3 = vadd.f32 1.0, %v236_v1  ;;  %v245_v4 = vadd.f32 1.0, %v244_v2  ;;  %s289_s22 = sshll.u32 %s233_s4, 4  ;;  %s258_s28 = scalar_lea.sflag [#allocation4], %s822_s11  ;;  %s853_s22 = int_to_ptr.vmem [resolvable:$true] %s289_s22 }
  0x55   : > { %s552_s26 = scalar_lea.vmem %s841_s17, 128  ;;  %p934_p3 = scmp.ne.s32.totalorder %s926_s24, 0 }
  0x56   : > { %488 = vrsqrt.f32 %v237_v3  ;;  %p553_p13 = scmp.ne.s32.totalorder %s841_s17, %s552_s26  ;;  %s654_s5 = smov [#allocation7]  }
  0x57   : > { %490 = vrsqrt.f32 %v245_v4  ;;  %s556_s10 = sshll.u32 %s654_s5, 4  ;;  %s557_s10 = int_to_ptr.vmem [resolvable:$false] %s556_s10 }
  0x58   : > { %p554_p7 = pnand %p553_p13, %p934_p3  ;;  %s558_s6 = scalar_lea.vmem %s557_s10, 256 }
  0x59   : > { %p559_p10 = scmp.lt.s32.totalorder %s841_s17, %s557_s10  ;;  %p560_p2 = scmp.lt.s32.totalorder %s558_s6, %s552_s26 }
  0x5a   : > { %p555_p8 = pneg %p554_p7 }
  0x5b   : > { %p561_p4 = por %p560_p2, %p559_p10 }
  0x5d   : > { %p562_p5 = pnand %p561_p4, %p555_p8 }
  0x63   : > { %v489_v7 = vpop.eup %488 }
  0x64   : > { %v491_v8 = vpop.eup %490  ;;  %v239_v9 = vmul.f32 %v489_v7, %v234_v5 }
  0x65   : > { %v248_v10 = vmul.f32 %v491_v8, %v247_v6 }
  0x66   : > { %v240_v11 = vmul.f32 0.5, %v239_v9 }
  0x67   : > { %v249_v12 = vmul.f32 0.58578646, %v248_v10 }
  0x68   : > { %492 = vtanh.f32 %v240_v11 }
  0x69   : > { %494 = vtanh.f32 %v249_v12 }
  0x75   : > { %v493_v13 = vpop.eup %492 }
  0x76   : > { %v495_v14 = vpop.eup %494  ;;  %v242_v15 = vmul.f32 0.5, %v493_v13 }
  0x77   : > { %v251_v16 = vmul.f32 0.5, %v495_v14 }
  0x78   : > { %v243_v17 = vadd.f32 0.5, %v242_v15 }
  0x79   : > { %v252_v18 = vadd.f32 0.5, %v251_v16 }
  0x7a   : > { %255 = vst [vmem:[%s226_s23] sm:$0xff] %v243_v17  ;;  %v253_v19 = vmul.f32 %v243_v17, %v243_v17 }
  0x7b   : > { %565 = shalt.err (!%p562_p5)
}
  0x7c   : > { %s566_s8 = scalar_lea.hbm %s851_s30, 128  ;;  %s570_s23 = scalar_lea.hbm %s920_s2, 256 }
  0x7d   : > { %p567_p9 = scmp.ne.s32.totalorder %s851_s30, %s566_s8  ;;  %p571_p12 = scmp.lt.s32.totalorder %s851_s30, %s920_s2 }
  0x7e   : > { %p572_p1 = scmp.lt.s32.totalorder %s570_s23, %s566_s8 }
  0x7f   : > { %p568_p0 = pnand %p567_p9, %p934_p3 }
  0x80   : > { %p573_p6 = por %p572_p1, %p571_p12 }
  0x81   : > { %p569_p11 = pneg %p568_p0 }
  0x83   : > { %p574_p13 = pnand %p573_p6, %p569_p11 }
  0x85   : > { %577 = shalt.err (!%p574_p13)
}
  0x86   : > { %436 = dma.vmem_to_hbm [thread:$0]  (%p934_p3), %s841_s17, 128, %s851_s30, %s258_s28   ;;  %v254_v20 = vsub.f32 %v252_v18, %v253_v19 }
  0x87   : > { %s287_s10 = scalar_lea.hbm %s921_s3, %s428_s20  ;;  %s263_s6 = scalar_lea.sflag [#allocation9], %s822_s11 }
  0x88   : > { %256 = vst [vmem:[%s233_s4] sm:$0xff] %v254_v20  ;;  %s578_s8 = scalar_lea.vmem %s853_s22, 128  ;;  %s655_s7 = smov [#allocation8]  }
  0x89   : > { %p579_p7 = scmp.ne.s32.totalorder %s853_s22, %s578_s8  ;;  %s582_s9 = sshll.u32 %s655_s7, 4  ;;  %s583_s9 = int_to_ptr.vmem [resolvable:$false] %s582_s9 }
  0x8a   : > { %s584_s23 = scalar_lea.vmem %s583_s9, 256  ;;  %p585_p2 = scmp.lt.s32.totalorder %s853_s22, %s583_s9 }
  0x8b   : > { %p580_p8 = pnand %p579_p7, %p934_p3  ;;  %p586_p4 = scmp.lt.s32.totalorder %s584_s23, %s578_s8 }
  0x8d   : > { %p581_p10 = pneg %p580_p8  ;;  %p587_p5 = por %p586_p4, %p585_p2 }
  0x8f   : > { %p588_p9 = pnand %p587_p5, %p581_p10 }
  0x91   : > { %591 = shalt.err (!%p588_p9)
}
  0x92   : > { %s592_s16 = scalar_lea.hbm %s287_s10, 128  ;;  %s596_s17 = scalar_lea.hbm %s921_s3, 256 }
  0x93   : > { %p593_p0 = scmp.ne.s32.totalorder %s287_s10, %s592_s16  ;;  %p597_p1 = scmp.lt.s32.totalorder %s287_s10, %s921_s3 }
  0x94   : > { %p598_p6 = scmp.lt.s32.totalorder %s596_s17, %s592_s16 }
  0x95   : > { %p594_p11 = pnand %p593_p0, %p934_p3 }
  0x96   : > { %p599_p13 = por %p598_p6, %p597_p1 }
  0x97   : > { %p595_p12 = pneg %p594_p11 }
  0x99   : > { %p600_p7 = pnand %p599_p13, %p595_p12 }
  0x9b   : > { %603 = shalt.err (!%p600_p7)
}
  0x9c   : > { %437 = dma.vmem_to_hbm [thread:$0]  (%p934_p3), %s853_s22, 128, %s287_s10, %s263_s6  }
  0x9d PF: > { %s301_s30 = sand.u32 1, %s638_s12   ;;  %p935_p8 = scmp.ne.s32.totalorder %s927_s25, 0 }
  0x9e   : > { %p936_p10 = scmp.ge.s32.totalorder %s650_s15, 2  ;;  %s302_s28 = scalar_lea.sflag [#allocation4], %s301_s30 }
  0xa0   : > { %p448_p2 = pnand %p936_p10, %p935_p8 }
  0xa2   : > { %p449_p4 = pneg %p448_p2 }
  0xa4   : > { %629 = dma.done.wait (%p449_p4), %s302_s28, 128  }
  0xa5   : > { %631 = vsyncadd (%p449_p4), %s302_s28, 4294967168  ;;  %s311_s29 = scalar_lea.sflag [#allocation9], %s301_s30 }
  0xa6   : > { %633 = dma.done.wait (%p449_p4), %s311_s29, 128  }
  0xa7   : > { %635 = vsyncadd (%p449_p4), %s311_s29, 4294967168  ;;  %p23_p3 = scmp.ge.s32.totalorder %s701_s18, 4   ;;  %s937_s12 = smov %s642_s13 }
  0xa8   : > { %s938_s13 = smov %s646_s14  ;;  %s939_s14 = smov %s713_s21 }
  0xa9   : > { %s940_s15 = smov %s701_s18  ;;  %25 = sbr.rel (!%p23_p3) target bundleno = 9 (0x9), region = 103 }
  0xae   :  { %316 = vsyncpa [#allocation3], 1 }
  0xaf   :  { %318 = vsyncpa [#allocation3 + $0x1], 1 }
  0xb0   :  { %319 = vsyncpa [#allocation6], 1 }
  0xb1   :  { %321 = vsyncpa [#allocation6 + $0x1], 1 }
  0xb2   :  { %322 = vsyncpa [#allocation4], 1 }
  0xb3   :  { %324 = vsyncpa [#allocation4 + $0x1], 1 }
  0xb4   :  { %325 = vsyncpa [#allocation9], 1 }
  0xb5   :  { %327 = vsyncpa [#allocation9 + $0x1], 1 }

</bundles_post_ra>
